<compile_context>
chip_gen: v7x
topology: tpu7x:2x2x1
jax: 0.10.0
libtpu: 0.0.40
codegen_flags: <defaults>
</compile_context>

<pallas_src>
import functools

import jax
import jax.numpy as jnp
from jax.experimental import pallas as pl
from jax.experimental.pallas import tpu as pltpu


def convdeepset_kernel(inv_ref, x_ref, t_ref, yT_ref, wT_ref, b_ref, o_ref,
                       acc_ref, *, use_density: bool, n_channels: int):
    ni = pl.program_id(2)

    @pl.when(ni == 0)
    def _():
        acc_ref[...] = jnp.zeros_like(acc_ref)

    x = x_ref[0].astype(jnp.float32)      # (tn, 1)  observation locations
    t = t_ref[0].astype(jnp.float32)      # (1, tm)  target locations (lanes)
    d = x - t                             # (tn, tm) pairwise signed distances
    d2 = d * d                            # (tn, tm) squared distances (f32)

    yT = yT_ref[0]                        # (C, tn)  channel-major observation values

    # Static, short channel loop.  Per channel: one lane-dense 2-D exp (EUP)
    # and one thin matmul that fuses the multiply-by-y with the N-reduction
    # onto the MXU (overlaps with the exp stream of the next channel).
    contribs = []
    for c in range(n_channels):
        wt_c = jnp.exp(d2 * inv_ref[c])   # inv_ref[c] = -0.5 / scale_c^2
        contribs.append(jnp.dot(yT[c:c + 1, :], wt_c,
                                preferred_element_type=jnp.float32))
    # Single accumulator update per grid step.
    acc_ref[...] += jnp.concatenate(contribs, axis=0)     # (C, tm)

    @pl.when(ni == pl.num_programs(2) - 1)
    def _():
        acc = acc_ref[...]                                 # (C, tm)
        if use_density:
            dens = acc[0:1, :]                             # (1, tm) raw density
            inv = 1.0 / (dens + 1e-8)                      # one recip row, reused
            row = jax.lax.broadcasted_iota(jnp.int32, acc.shape, 0)
            feat = jnp.where(row == 0, acc, acc * inv)     # keep raw density in ch 0
        else:
            feat = acc
        # Point-wise linear, transposed: (O, C) @ (C, tm) -> lane-dense (O, tm).
        outT = jnp.dot(wT_ref[...], feat, preferred_element_type=jnp.float32)
        outT = outT + b_ref[...]                           # (O, 1) broadcast over lanes
        o_ref[0] = outT.astype(o_ref.dtype)


def _pad_dim(dim, max_tile):
    """Returns (padded_dim, tile).  Full-dim block if small, else tile=max_tile."""
    if dim <= max_tile:
        return dim, dim
    padded = pl.cdiv(dim, max_tile) * max_tile
    return padded, max_tile


def conv_deep_set(x, y, t, sigma, weight, bias, *, use_density=True,
                  max_tm=512, max_tn=512):
    """x: (B, N, 1), y: (B, N, Cin), t: (B, M, 1) -> (B, M, out_channels)."""
    B, N, _ = x.shape
    M = t.shape[1]
    dtype = x.dtype

    if use_density:
        density = jnp.ones((B, N, 1), dtype)
        y_aug = jnp.concatenate([density, y.astype(dtype)], axis=2)
    else:
        y_aug = y.astype(dtype)
    C = y_aug.shape[-1]
    O = weight.shape[1]

    # Channel-major observation values, lane-dense along N: (B, C, N).
    yT = jnp.transpose(y_aug, (0, 2, 1))
    # Target locations as a row, lane-dense along M: (B, 1, M).
    t_row = jnp.transpose(t, (0, 2, 1)).astype(dtype)

    # Per-channel RBF coefficient, sign folded in:  -0.5 / exp(sigma)^2 (SMEM scalars).
    scales = jnp.exp(sigma).astype(jnp.float32)
    neg_inv = (-0.5 / (scales * scales)).reshape(C)

    wT = jnp.transpose(weight, (1, 0)).astype(dtype)   # (O, C)
    bias_col = bias.reshape(O, 1).astype(dtype)        # (O, 1)

    # Tile sizes (sized to fit v7x's smaller scoped VMEM as well as v5e/v6e).
    Np, tn = _pad_dim(N, max_tn)
    Mp, tm = _pad_dim(M, max_tm)

    x_p = x
    if Np != N:
        # Zero-padded observations contribute nothing: y_aug rows (incl. the
        # density channel) are zero-padded, so their weighted sum vanishes.
        x_p = jnp.pad(x, ((0, 0), (0, Np - N), (0, 0)))
        yT = jnp.pad(yT, ((0, 0), (0, 0), (0, Np - N)))
    if Mp != M:
        t_row = jnp.pad(t_row, ((0, 0), (0, 0), (0, Mp - M)))

    grid = (B, Mp // tm, Np // tn)
    kernel = functools.partial(convdeepset_kernel,
                               use_density=use_density, n_channels=C)

    outT = pl.pallas_call(
        kernel,
        out_shape=jax.ShapeDtypeStruct((B, O, Mp), dtype),
        grid_spec=pltpu.PrefetchScalarGridSpec(
            num_scalar_prefetch=0,
            grid=grid,
            in_specs=[
                # per-channel -0.5/scale^2, read as scalars from SMEM
                pl.BlockSpec(memory_space=pltpu.MemorySpace.SMEM),
                pl.BlockSpec((1, tn, 1), lambda b, mi, ni: (b, ni, 0)),   # x
                pl.BlockSpec((1, 1, tm), lambda b, mi, ni: (b, 0, mi)),   # t (row)
                pl.BlockSpec((1, C, tn), lambda b, mi, ni: (b, 0, ni)),   # y_aug^T
                pl.BlockSpec((O, C),     lambda b, mi, ni: (0, 0)),       # weight^T
                pl.BlockSpec((O, 1),     lambda b, mi, ni: (0, 0)),       # bias col
            ],
            out_specs=pl.BlockSpec((1, O, tm), lambda b, mi, ni: (b, 0, mi)),
            scratch_shapes=[pltpu.VMEM((C, tm), jnp.float32)],
        ),
        compiler_params=pltpu.CompilerParams(
            dimension_semantics=("parallel", "parallel", "arbitrary")),
    )(neg_inv, x_p, t_row, yT, wT, bias_col)

    # Back to the module's (B, M, O) layout; drop M padding.
    return jnp.transpose(outT, (0, 2, 1))[:, :M, :]


def ref_forward(x, y, t, sigma, weight, bias, *, use_density=True):
    """Pure-JAX reference mirroring the PyTorch forward."""
    scales = jnp.exp(sigma)
    d = x - jnp.transpose(t, (0, 2, 1))                        # (B, N, M)
    wt = jnp.exp(-0.5 * (d ** 2)[..., None] / (scales ** 2))   # (B, N, M, C)
    if use_density:
        dens_in = jnp.ones(y.shape[:2] + (1,), y.dtype)
        y_out = jnp.concatenate([dens_in, y], axis=2)
    else:
        y_out = y
    y_out = (y_out[:, :, None, :] * wt).sum(1)                 # (B, M, C)
    if use_density:
        dens, conv = y_out[..., :1], y_out[..., 1:]
        y_out = jnp.concatenate([dens, conv / (dens + 1e-8)], axis=-1)
    return y_out @ weight + bias


if __name__ == "__main__":
    key = jax.random.PRNGKey(0)
    kx, ky, kt, kw = jax.random.split(key, 4)

    B, N, M = 2, 8, 16          # batch, observations, target locations
    in_channels = 4             # y channels (density channel appended -> C=5)
    out_channels = 8
    init_length_scale = 0.1
    use_density = True
    C = in_channels + 1 if use_density else in_channels

    x = jax.random.uniform(kx, (B, N, 1), jnp.float32, -2.0, 2.0)
    y = jax.random.normal(ky, (B, N, in_channels), jnp.float32)
    t = jax.random.uniform(kt, (B, M, 1), jnp.float32, -2.0, 2.0)

    # Deterministic parameter init (synthetic; not a checkpoint load).
    sigma = jnp.log(init_length_scale) * jnp.ones((C,), jnp.float32)
    # nn.Linear(C, O) weight (Xavier-normal-style), stored as (C, O) = torch_weight.T
    weight = (jax.random.normal(kw, (C, out_channels), jnp.float32)
              * jnp.sqrt(2.0 / (C + out_channels)))
    bias = jnp.zeros((out_channels,), jnp.float32)

    # TODO(synk): only the RBF forward path is implemented (matern / one_sided_rbf
    # variants are unused by forward() and omitted).
    out = conv_deep_set(x, y, t, sigma, weight, bias, use_density=use_density)
    out = jax.block_until_ready(out)

    ref = ref_forward(x, y, t, sigma, weight, bias, use_density=use_density)
    assert out.shape == (B, M, out_channels)
    assert jnp.allclose(out, ref, rtol=1e-5, atol=1e-5), "mismatch vs reference"

    print("KERNEL_OK")
</pallas_src>

<mosaic_0001>
module attributes {stable_mosaic.version = 11 : i64} {
  func.func @convdeepset_kernel(%arg0: i32, %arg1: i32, %arg2: i32, %arg3: memref<5xf32, #tpu.memory_space<smem>>, %arg4: memref<1x8x1xf32, #tpu.memory_space<vmem>>, %arg5: memref<1x1x16xf32, #tpu.memory_space<vmem>>, %arg6: memref<1x5x8xf32, #tpu.memory_space<vmem>>, %arg7: memref<8x5xf32, #tpu.memory_space<vmem>>, %arg8: memref<8x1xf32, #tpu.memory_space<vmem>>, %arg9: memref<1x8x16xf32, #tpu.memory_space<vmem>>, %arg10: memref<5x16xf32, #tpu.memory_space<vmem>>) attributes {dimension_semantics = [#tpu.dimension_semantics<parallel>, #tpu.dimension_semantics<parallel>, #tpu.dimension_semantics<arbitrary>], iteration_bounds = array<i64: 2, 1, 1>, scalar_prefetch = 0 : i64, scratch_operands = 1 : i64, tpu.core_type = #tpu.core_type<tc>, window_params = [{transform_indices = @transform_0, window_bounds = array<i64: 5>}, {transform_indices = @transform_1, window_bounds = array<i64: 1, 8, 1>}, {transform_indices = @transform_2, window_bounds = array<i64: 1, 1, 16>}, {transform_indices = @transform_3, window_bounds = array<i64: 1, 5, 8>}, {pipeline_mode = #tpu.pipeline_mode<synchronous>, transform_indices = @transform_4, window_bounds = array<i64: 8, 5>}, {pipeline_mode = #tpu.pipeline_mode<synchronous>, transform_indices = @transform_5, window_bounds = array<i64: 8, 1>}, {transform_indices = @transform_6, window_bounds = array<i64: 1, 8, 16>}]} {
    %c0_i32 = arith.constant 0 : i32
    %0 = arith.cmpi eq, %arg2, %c0_i32 : i32
    %1 = arith.extui %0 : i1 to i32
    %c0_i32_0 = arith.constant 0 : i32
    %2 = arith.cmpi ne, %1, %c0_i32_0 : i32
    scf.if %2 {
      %cst_20 = arith.constant 0.000000e+00 : f32
      %50 = vector.broadcast %cst_20 : f32 to vector<5x16xf32>
      %c0_21 = arith.constant 0 : index
      %c0_22 = arith.constant 0 : index
      %51 = vector.load %arg10[%c0_21, %c0_22] : memref<5x16xf32, #tpu.memory_space<vmem>>, vector<5x16xf32>
      tpu.vector_store %arg10[%c0_21, %c0_22], %50 {strides = array<i32>} : memref<5x16xf32, #tpu.memory_space<vmem>>, vector<5x16xf32>,
    } else {
    }
    %c0 = arith.constant 0 : index
    %c0_1 = arith.constant 0 : index
    %c0_2 = arith.constant 0 : index
    %3 = vector.load %arg4[%c0, %c0_1, %c0_2] : memref<1x8x1xf32, #tpu.memory_space<vmem>>, vector<1x8x1xf32>
    %4 = vector.shape_cast %3 : vector<1x8x1xf32> to vector<8x1xf32>
    %c0_3 = arith.constant 0 : index
    %c0_4 = arith.constant 0 : index
    %c0_5 = arith.constant 0 : index
    %5 = vector.load %arg5[%c0_3, %c0_4, %c0_5] : memref<1x1x16xf32, #tpu.memory_space<vmem>>, vector<1x1x16xf32>
    %6 = vector.shape_cast %5 : vector<1x1x16xf32> to vector<1x16xf32>
    %7 = vector.broadcast %4 : vector<8x1xf32> to vector<8x16xf32>
    %8 = vector.broadcast %6 : vector<1x16xf32> to vector<8x16xf32>
    %9 = arith.subf %7, %8 : vector<8x16xf32>
    %10 = arith.mulf %9, %9 : vector<8x16xf32>
    %c0_6 = arith.constant 0 : index
    %c0_7 = arith.constant 0 : index
    %c0_8 = arith.constant 0 : index
    %11 = vector.load %arg6[%c0_6, %c0_7, %c0_8] : memref<1x5x8xf32, #tpu.memory_space<vmem>>, vector<1x5x8xf32>
    %12 = vector.shape_cast %11 : vector<1x5x8xf32> to vector<5x8xf32>
    %c0_9 = arith.constant 0 : index
    %13 = memref.load %arg3[%c0_9] : memref<5xf32, #tpu.memory_space<smem>>
    %14 = vector.broadcast %13 : f32 to vector<8x16xf32>
    %15 = arith.mulf %10, %14 : vector<8x16xf32>
    %16 = math.exp %15 : vector<8x16xf32>
    %17 = vector.extract_strided_slice %12 {offsets = [0, 0], sizes = [1, 8], strides = [1, 1]} : vector<5x8xf32> to vector<1x8xf32>
    %cst = arith.constant dense<0.000000e+00> : vector<1x16xf32>
    %18 = tpu.matmul %17, %16, %cst {dimension_numbers = #tpu.dot_dimension_numbers<[1], [0], [0], [1], [0, 0, 1, 1], [], []>} : vector<1x8xf32>, vector<8x16xf32>, vector<1x16xf32> -> vector<1x16xf32>
    %c1 = arith.constant 1 : index
    %19 = memref.load %arg3[%c1] : memref<5xf32, #tpu.memory_space<smem>>
    %20 = vector.broadcast %19 : f32 to vector<8x16xf32>
    %21 = arith.mulf %10, %20 : vector<8x16xf32>
    %22 = math.exp %21 : vector<8x16xf32>
    %23 = vector.extract_strided_slice %12 {offsets = [1, 0], sizes = [1, 8], strides = [1, 1]} : vector<5x8xf32> to vector<1x8xf32>
    %cst_10 = arith.constant dense<0.000000e+00> : vector<1x16xf32>
    %24 = tpu.matmul %23, %22, %cst_10 {dimension_numbers = #tpu.dot_dimension_numbers<[1], [0], [0], [1], [0, 0, 1, 1], [], []>} : vector<1x8xf32>, vector<8x16xf32>, vector<1x16xf32> -> vector<1x16xf32>
    %c2 = arith.constant 2 : index
    %25 = memref.load %arg3[%c2] : memref<5xf32, #tpu.memory_space<smem>>
    %26 = vector.broadcast %25 : f32 to vector<8x16xf32>
    %27 = arith.mulf %10, %26 : vector<8x16xf32>
    %28 = math.exp %27 : vector<8x16xf32>
    %29 = vector.extract_strided_slice %12 {offsets = [2, 0], sizes = [1, 8], strides = [1, 1]} : vector<5x8xf32> to vector<1x8xf32>
    %cst_11 = arith.constant dense<0.000000e+00> : vector<1x16xf32>
    %30 = tpu.matmul %29, %28, %cst_11 {dimension_numbers = #tpu.dot_dimension_numbers<[1], [0], [0], [1], [0, 0, 1, 1], [], []>} : vector<1x8xf32>, vector<8x16xf32>, vector<1x16xf32> -> vector<1x16xf32>
    %c3 = arith.constant 3 : index
    %31 = memref.load %arg3[%c3] : memref<5xf32, #tpu.memory_space<smem>>
    %32 = vector.broadcast %31 : f32 to vector<8x16xf32>
    %33 = arith.mulf %10, %32 : vector<8x16xf32>
    %34 = math.exp %33 : vector<8x16xf32>
    %35 = vector.extract_strided_slice %12 {offsets = [3, 0], sizes = [1, 8], strides = [1, 1]} : vector<5x8xf32> to vector<1x8xf32>
    %cst_12 = arith.constant dense<0.000000e+00> : vector<1x16xf32>
    %36 = tpu.matmul %35, %34, %cst_12 {dimension_numbers = #tpu.dot_dimension_numbers<[1], [0], [0], [1], [0, 0, 1, 1], [], []>} : vector<1x8xf32>, vector<8x16xf32>, vector<1x16xf32> -> vector<1x16xf32>
    %c4 = arith.constant 4 : index
    %37 = memref.load %arg3[%c4] : memref<5xf32, #tpu.memory_space<smem>>
    %38 = vector.broadcast %37 : f32 to vector<8x16xf32>
    %39 = arith.mulf %10, %38 : vector<8x16xf32>
    %40 = math.exp %39 : vector<8x16xf32>
    %41 = vector.extract_strided_slice %12 {offsets = [4, 0], sizes = [1, 8], strides = [1, 1]} : vector<5x8xf32> to vector<1x8xf32>
    %cst_13 = arith.constant dense<0.000000e+00> : vector<1x16xf32>
    %42 = tpu.matmul %41, %40, %cst_13 {dimension_numbers = #tpu.dot_dimension_numbers<[1], [0], [0], [1], [0, 0, 1, 1], [], []>} : vector<1x8xf32>, vector<8x16xf32>, vector<1x16xf32> -> vector<1x16xf32>
    %c0_14 = arith.constant 0 : index
    %c0_15 = arith.constant 0 : index
    %43 = vector.load %arg10[%c0_14, %c0_15] : memref<5x16xf32, #tpu.memory_space<vmem>>, vector<5x16xf32>
    %44 = tpu.concatenate %18, %24, %30, %36, %42 in 0 : vector<1x16xf32>, vector<1x16xf32>, vector<1x16xf32>, vector<1x16xf32>, vector<1x16xf32> -> vector<5x16xf32>
    %45 = arith.addf %43, %44 : vector<5x16xf32>
    %c0_16 = arith.constant 0 : index
    %c0_17 = arith.constant 0 : index
    %46 = vector.load %arg10[%c0_16, %c0_17] : memref<5x16xf32, #tpu.memory_space<vmem>>, vector<5x16xf32>
    tpu.vector_store %arg10[%c0_16, %c0_17], %45 {strides = array<i32>} : memref<5x16xf32, #tpu.memory_space<vmem>>, vector<5x16xf32>,
    %c0_i32_18 = arith.constant 0 : i32
    %47 = arith.cmpi eq, %arg2, %c0_i32_18 : i32
    %48 = arith.extui %47 : i1 to i32
    %c0_i32_19 = arith.constant 0 : i32
    %49 = arith.cmpi ne, %48, %c0_i32_19 : i32
    scf.if %49 {
      %c0_20 = arith.constant 0 : index
      %c0_21 = arith.constant 0 : index
      %50 = vector.load %arg10[%c0_20, %c0_21] : memref<5x16xf32, #tpu.memory_space<vmem>>, vector<5x16xf32>
      %51 = vector.extract_strided_slice %50 {offsets = [0, 0], sizes = [1, 16], strides = [1, 1]} : vector<5x16xf32> to vector<1x16xf32>
      %cst_22 = arith.constant 9.99999993E-9 : f32
      %52 = vector.broadcast %cst_22 : f32 to vector<1x16xf32>
      %53 = arith.addf %51, %52 : vector<1x16xf32>
      %cst_23 = arith.constant 1.000000e+00 : f32
      %54 = vector.broadcast %cst_23 : f32 to vector<1x16xf32>
      %55 = arith.divf %54, %53 : vector<1x16xf32>
      %56 = tpu.iota {dimensions = array<i32: 0>} : vector<5x16xi32>
      %c0_i32_24 = arith.constant 0 : i32
      %57 = vector.broadcast %c0_i32_24 : i32 to vector<5x16xi32>
      %58 = arith.cmpi eq, %56, %57 : vector<5x16xi32>
      %59 = vector.broadcast %55 : vector<1x16xf32> to vector<5x16xf32>
      %60 = arith.mulf %50, %59 : vector<5x16xf32>
      %61 = arith.select %58, %50, %60 : vector<5x16xi1>, vector<5x16xf32>
      %c0_25 = arith.constant 0 : index
      %c0_26 = arith.constant 0 : index
      %62 = vector.load %arg7[%c0_25, %c0_26] : memref<8x5xf32, #tpu.memory_space<vmem>>, vector<8x5xf32>
      %cst_27 = arith.constant dense<0.000000e+00> : vector<8x16xf32>
      %63 = tpu.matmul %62, %61, %cst_27 {dimension_numbers = #tpu.dot_dimension_numbers<[1], [0], [0], [1], [0, 0, 1, 1], [], []>} : vector<8x5xf32>, vector<5x16xf32>, vector<8x16xf32> -> vector<8x16xf32>
      %c0_28 = arith.constant 0 : index
      %c0_29 = arith.constant 0 : index
      %64 = vector.load %arg8[%c0_28, %c0_29] : memref<8x1xf32, #tpu.memory_space<vmem>>, vector<8x1xf32>
      %65 = vector.broadcast %64 : vector<8x1xf32> to vector<8x16xf32>
      %66 = arith.addf %63, %65 : vector<8x16xf32>
      %c0_30 = arith.constant 0 : index
      %c0_31 = arith.constant 0 : index
      %c0_32 = arith.constant 0 : index
      %67 = vector.load %arg9[%c0_30, %c0_31, %c0_32] : memref<1x8x16xf32, #tpu.memory_space<vmem>>, vector<1x8x16xf32>
      %68 = vector.shape_cast %67 : vector<1x8x16xf32> to vector<8x16xf32>
      %69 = vector.shape_cast %66 : vector<8x16xf32> to vector<1x8x16xf32>
      tpu.vector_store %arg9[%c0_30, %c0_31, %c0_32], %69 {strides = array<i32>} : memref<1x8x16xf32, #tpu.memory_space<vmem>>, vector<1x8x16xf32>,
    } else {
    }
    return
  }
  func.func @transform_0(%arg0: i32, %arg1: i32, %arg2: i32) -> i32 {
    %c0_i32 = arith.constant 0 : i32
    %c0_i32_0 = arith.constant 0 : i32
    return %c0_i32 : i32
  }
  func.func @transform_1(%arg0: i32, %arg1: i32, %arg2: i32) -> (i32, i32, i32) {
    %c0_i32 = arith.constant 0 : i32
    %c0_i32_0 = arith.constant 0 : i32
    return %arg0, %arg2, %c0_i32 : i32, i32, i32
  }
  func.func @transform_2(%arg0: i32, %arg1: i32, %arg2: i32) -> (i32, i32, i32) {
    %c0_i32 = arith.constant 0 : i32
    %c0_i32_0 = arith.constant 0 : i32
    return %arg0, %c0_i32, %arg1 : i32, i32, i32
  }
  func.func @transform_3(%arg0: i32, %arg1: i32, %arg2: i32) -> (i32, i32, i32) {
    %c0_i32 = arith.constant 0 : i32
    %c0_i32_0 = arith.constant 0 : i32
    return %arg0, %c0_i32, %arg2 : i32, i32, i32
  }
  func.func @transform_4(%arg0: i32, %arg1: i32, %arg2: i32) -> (i32, i32) {
    %c0_i32 = arith.constant 0 : i32
    %c0_i32_0 = arith.constant 0 : i32
    %c0_i32_1 = arith.constant 0 : i32
    return %c0_i32, %c0_i32_0 : i32, i32
  }
  func.func @transform_5(%arg0: i32, %arg1: i32, %arg2: i32) -> (i32, i32) {
    %c0_i32 = arith.constant 0 : i32
    %c0_i32_0 = arith.constant 0 : i32
    %c0_i32_1 = arith.constant 0 : i32
    return %c0_i32, %c0_i32_0 : i32, i32
  }
  func.func @transform_6(%arg0: i32, %arg1: i32, %arg2: i32) -> (i32, i32, i32) {
    %c0_i32 = arith.constant 0 : i32
    %c0_i32_0 = arith.constant 0 : i32
    return %arg0, %c0_i32, %arg1 : i32, i32, i32
  }
}

</mosaic_0001>

<bundles_post_ra>
// kernel: tpu_custom_call.1
= control target key start
LH: loop header
LB: loop body
LE: loop exit
PB: predicated region body
PF: predicated region fallthrough
CT: control target
= control target key end

     0   :  { %11 = vsyncpa [#allocation5], 0  ;;  %s1482_s0 = inlined_call_operand.vmem [shape: f32[5], index: 0, kind: input, shape index: {}]   ;;  %s1483_s1 = inlined_call_operand.vmem [shape: f32[2,8,1], index: 1, kind: input, shape index: {}]   ;;  %s1484_s2 = inlined_call_operand.vmem [shape: f32[2,1,16], index: 2, kind: input, shape index: {}]   ;;  %s1485_s3 = inlined_call_operand.vmem [shape: f32[2,5,8], index: 3, kind: input, shape index: {}]   ;;  %s1486_s4 = inlined_call_operand.vmem [shape: f32[8,5], index: 4, kind: input, shape index: {}]   ;;  %s1487_s5 = inlined_call_operand.vmem [shape: f32[8,1], index: 5, kind: input, shape index: {}]   ;;  %s1488_s6 = inlined_call_operand.hbm [shape: f32[2,8,16], index: 6, kind: output, shape index: {}]  }
   0x1   :  { %12 = vsyncpa [#allocation4], 0 }
   0x2   :  { %14 = vsyncpa [#allocation4 + $0x1], 0  ;;  %s1303_s21 = smov 0   ;;  %s1305_s22 = smov 0  }
   0x3   :  { %s1307_s23 = smov 0   ;;  %s1309_s24 = smov 0  }
   0x4   :  { %s1311_s25 = smov 0   ;;  %s1313_s26 = smov 0  }
   0x5 LB: > { %s1014_s27 = sadd.s32 4294967295, %s1261_s26   ;;  %s1015_s28 = sadd.s32 4294967294, %s1261_s26   ;;  %s1261_s26 = sphi %s1313_s26, %s20_s26   ;;  %s1257_s25 = sphi %s1311_s25, %s1497_s25   ;;  %s1253_s24 = sphi %s1309_s24, %s1496_s24   ;;  %s1249_s23 = sphi %s1307_s23, %s1495_s23   ;;  %s1245_s22 = sphi %s1305_s22, %s1494_s22   ;;  %s1241_s21 = sphi %s1303_s21, %s1493_s21  }
   0x6   : > { %s39_s29 = sadd.s32 1, %s1257_s25  ;;  %s195_s30 = sadd.s32 1, %s1249_s23 }
   0x7   : > { %p41_p0 = scmp.ge.s32.totalorder %s39_s29, 2  ;;  %p205_p1 = scmp.ne.s32.totalorder %s1249_s23, %s1245_s22 }
   0x8   : > { %p206_p2 = scmp.eq.s32.totalorder %s1014_s27, 1  ;;  %p211_p3 = scmp.ne.s32.totalorder %s1245_s22, %s1241_s21 }
   0x9   : > { %s1499_s29 = smov (%p41_p0, %s39_s29), 0  ;;  %p212_p5 = scmp.eq.s32.totalorder %s1015_s28, 1 }
   0xa   : > { %p1343_p4 = por %p206_p2, %p205_p1  ;;  %s190_s8 = ssub.s32 %s1257_s25, %s1499_s29 }
   0xb   : > { %p1016_p6 = scmp.ge.s32.totalorder %s1261_s26, 1  ;;  %p193_p7 = scmp.eq.s32.totalorder %s190_s8, 0 }
   0xc   : > { %p1350_p8 = por %p212_p5, %p211_p3  ;;  %p219_p9 = scmp.lt.s32.totalorder %s1261_s26, 3 }
   0xd   : > { %s1356_s10 = scalar_select %p193_p7, %s1249_s23, %s195_s30  }
   0xe   : > { %p1358_p10 = pnand %p1016_p6, %p219_p9  ;;  %p1362_p11 = scmp.eq.s32.totalorder %s1014_s27, 0 }
   0xf   : > { %s232_s15 = sshll.u32 %s1482_s0, 4  ;;  %s233_s15 = int_to_ptr.vmem [resolvable:$true] %s232_s15 }
  0x10   : > { %p1088_p12 = pneg %p1358_p10  ;;  %s1164_s16 = scalar_lea.vmem %s233_s15, 16 }
  0x11   : > { %p1165_p0 = scmp.ne.s32.totalorder %s233_s15, %s1164_s16  ;;  %p1172_p5 = scmp.lt.s32.totalorder %s233_s15, %s233_s15 }
  0x12   : > { %p1089_p13 = pnand %p1362_p11, %p1088_p12  ;;  %p1173_p6 = scmp.lt.s32.totalorder %s1164_s16, %s1164_s16 }
  0x14   : > { %p1166_p1 = pneg %p1089_p13  ;;  %p1174_p7 = por %p1173_p6, %p1172_p5 }
  0x16   : > { %p1167_p2 = pnand %p1166_p1, %p1165_p0 }
  0x18   : > { %p1168_p3 = pneg %p1167_p2 }
  0x1a   : > { %p1175_p9 = pnand %p1174_p7, %p1168_p3 }
  0x1c   : > { %1178 = shalt.err (!%p1175_p9)
}
  0x1d   : > { %s1263_s17 = smov [#allocation3]   ;;  %280 = sbr.rel (%p1358_p10) target bundleno = 674 (0x2a2), region = 44 }
  0x1e   : > { %1091 = dma.vmem_to_smem (!%p1089_p13), %s233_s15, 16, %s1263_s17, [#allocation5]  }
  0x24   : > { %1232 = dma.done.wait (%p1362_p11), [#allocation5], 16  }
  0x25   : > { %1234 = vsyncadd (%p1362_p11), [#allocation5], 4294967280 }
  0x26   : > { %286 = sfence }
  0x27   : > { %p326_p12 = scmp.lt.s32.totalorder %s1253_s24, 1  ;;  %v1264_v0 = vmov 0   ;;  %v800_v2 = vld [vmem:[%s1487_s5] sm:$0xff]  ;;  %v1265_v3 = vmov 0.0   ;;  %vm1266_vm0 = vmmov 0   ;;  %s368_s11 = sld [smem:[#allocation3]]  ;;  %v790_v55 = vlaneseq }
  0x28   : > { %1151 = vset.pattern.permute.xlu0 %v1264_v0  ;;  %1052 = vmatprep.subr.mxu0 %v1265_v3  ;;  %s1026_s15 = sld [smem:[#allocation3 + $0x1]]  ;;  %s1028_s16 = sld [smem:[#allocation3 + $0x2]]  ;;  %vm373_vm1 = vcmask 64512   ;;  %vm350_vm2 = vcmask 126976   ;;  %vm772_vm3 = vcmask 1040384   ;;  %vm774_vm4 = vcmask 1041408  }
  0x29   : > { %s1381_s18 = scalar_select %p326_p12, %s1253_s24, 1  ;;  %1057 = vmatprep.subr.mxu1 %v1265_v3  ;;  %1054 = vmatprep.mubr.msk.f32.mxu0 %vm1266_vm0, %v1265_v3  ;;  %351 = vst.msk [vmem:[#allocation2] sm:$0x1f] %vm350_vm2, %v1265_v3  ;;  %vm776_vm5 = vcmask 1042432   ;;  %vm778_vm6 = vcmask 1043456   ;;  %v791_v56 = vshrl.u32 %v790_v55, 7 }
  0x2a   : > { %1059 = vmatprep.mubr.msk.f32.mxu1 %vm1266_vm0, %v1265_v3  ;;  %s1030_s17 = sld [smem:[#allocation3 + $0x3]]  ;;  %s1032_s20 = sld [smem:[#allocation3 + $0x4]]  ;;  %vm810_vm8 = vcmask 1044480   ;;  %v799_v61 = vld [vmem:[%s1486_s4] sm:$0xff]  ;;  %vm806_vm9 = vcmask 39936   ;;  %vm884_vm10 = vcmask 130048  }
  0x2b   : > { %s1022_s19 = sshll.u32 %s1381_s18, 3  ;;  %s338_s14 = scalar_lea.vmem %s1484_s2, %s1381_s18  ;;  %v795_v57 = vsub.s32 0, %v791_v56  ;;  %vm792_vm7 = vcmp.eq.s32.totalorder %v791_v56, 0 }
  0x2c   : > { %s332_s28 = scalar_lea.vmem %s1483_s1, %s1022_s19  ;;  %v1024_v4 = vld [vmem:[%s338_s14] ss:$0 sm:$0xff]  ;;  %s345_s30 = scalar_lea.vmem %s1485_s3, %s1022_s19 }
  0x2d   : > { %v352_v1 = vld [vmem:[%s332_s28] sm:$0xff]  ;;  %v369_v7 = vstv %s368_s11  ;;  %s323_s8 = sand.u32 1, %s1245_s22   ;;  %s1037_s12 = sshll.u32 %s1253_s24, 7 }
  0x2e   : > { %356 = vperm.xlu0 %1151, %v352_v1   ;;  %v448_v9 = vstv %s1026_s15  ;;  %v526_v10 = vstv %s1028_s16  ;;  %v367_v23 = vld [vmem:[%s345_s30] sm:$0x1f]  ;;  %s1021_s11 = sshll.u32 %s323_s8, 3  ;;  %s1267_s27 = smov [#allocation6]  }
  0x2f   : > { %v452_v24 = vrot.slane %v367_v23, 1  ;;  %v530_v27 = vrot.slane %v367_v23, 2  ;;  %v608_v30 = vrot.slane %v367_v23, 3  ;;  %v686_v32 = vrot.slane %v367_v23, 4  ;;  %s325_s13 = scalar_lea.vmem [#allocation6], %s1021_s11  ;;  %s1183_s28 = sshll.u32 %s1267_s27, 4  ;;  %s1184_s28 = int_to_ptr.vmem [resolvable:$false] %s1183_s28 }
  0x30   : > { %v604_v11 = vstv %s1030_s17  ;;  %v682_v14 = vstv %s1032_s20  ;;  %v759_v48 = vld [vmem:[#allocation2] sm:$0x1f]  ;;  %s901_s14 = sshll.u32 %s325_s13, 4  ;;  %s1435_s17 = scalar_lea.hbm %s1488_s6, %s1037_s12  ;;  %s1437_s14 = int_to_ptr.vmem [resolvable:$true] %s901_s14 }
  0x31   : > { %s887_s20 = scalar_lea.sflag [#allocation4], %s323_s8  ;;  %s1179_s24 = scalar_lea.vmem %s1437_s14, 128 }
  0x32   : > { %803 = vperm.xlu0 %1151, %v800_v2   ;;  %p1180_p10 = scmp.ne.s32.totalorder %s1437_s14, %s1179_s24  ;;  %s1185_s30 = scalar_lea.vmem %s1184_s28, 256 }
  0x33   : > { %p1186_p0 = scmp.lt.s32.totalorder %s1437_s14, %s1184_s28  ;;  %p1187_p1 = scmp.lt.s32.totalorder %s1185_s30, %s1179_s24 }
  0x34   : > { %p1181_p11 = pnand %p1180_p10, %p1343_p4 }
  0x35   : > { %p1188_p2 = por %p1187_p1, %p1186_p0 }
  0x36   : > { %p1182_p13 = pneg %p1181_p11 }
  0x38   : > { %p1189_p3 = pnand %p1188_p2, %p1182_p13 }
  0xad   : > { %v357_v5 = vpop.permute.xlu0 %356 }
  0xae   : > { %v365_v6 = vsub.f32 %v357_v5, %v1024_v4 }
  0xb0   : > { %v366_v8 = vmul.f32 %v365_v6, %v365_v6 }
  0xb1   : > { %v804_v63 = vpop.permute.xlu0 %803 }
  0xb2   : > { %v370_v12 = vmul.f32 %v369_v7, %v366_v8  ;;  %v449_v13 = vmul.f32 %v448_v9, %v366_v8  ;;  %v527_v15 = vmul.f32 %v526_v10, %v366_v8  ;;  %v605_v16 = vmul.f32 %v604_v11, %v366_v8 }
  0xb3   : > { %v683_v19 = vmul.f32 %v682_v14, %v366_v8 }
  0xb4   : > { %v371_v17 = vmul.f32 1.442695, %v370_v12  ;;  %v450_v18 = vmul.f32 1.442695, %v449_v13  ;;  %v528_v20 = vmul.f32 1.442695, %v527_v15 }
  0xb5   : > { %v606_v21 = vmul.f32 1.442695, %v605_v16  ;;  %v684_v22 = vmul.f32 1.442695, %v683_v19 }
  0xb6   : > { %1152 = vpow2.f32 %v371_v17 }
  0xb7   : > { %1154 = vpow2.f32 %v450_v18 }
  0xb8   : > { %1156 = vpow2.f32 %v528_v20 }
  0xb9   : > { %1158 = vpow2.f32 %v606_v21 }
  0xba   : > { %1160 = vpow2.f32 %v684_v22 }
  0xc0   : > { %v1153_v25 = vpop.eup %1152 }
  0xc1   : > { %v1155_v26 = vpop.eup %1154  ;;  %1053 = vmatpush3.msra.mxu0 %v1153_v25 }
  0xc2   : > { %1058 = vmatpush3.msra.mxu1 %v1155_v26  ;;  %1055 = vmatmul.mubr.msk.f32.vlgmr.msra.gmra.mrb[0].mxu0 %vm373_vm1, %v367_v23  ;;  %v1157_v28 = vpop.eup %1156 }
  0xc3   : > { %1060 = vmatmul.mubr.msk.f32.vlgmr.msra.gmra.mrb[0].mxu1 %vm373_vm1, %v452_v24  ;;  %1062 = vmatprep.subr.mxu0 %v1265_v3  ;;  %v1159_v29 = vpop.eup %1158 }
  0xc4   : > { %1067 = vmatprep.subr.mxu1 %v1265_v3  ;;  %1063 = vmatpush3.msra.mxu0 %v1157_v28  ;;  %v1161_v31 = vpop.eup %1160 }
  0xc5   : > { %1068 = vmatpush3.msra.mxu1 %v1159_v29  ;;  %1064 = vmatprep.mubr.msk.f32.mxu0 %vm1266_vm0, %v1265_v3 }
  0xc6   : > { %1072 = vmatprep.subr.mxu0 %v1265_v3  ;;  %1065 = vmatmul.mubr.msk.f32.vlgmr.msra.gmra.mrb[2].mxu0 %vm373_vm1, %v530_v27 }
  0xc7   : > { %1069 = vmatprep.mubr.msk.f32.mxu1 %vm1266_vm0, %v1265_v3  ;;  %1073 = vmatpush3.msra.mxu0 %v1161_v31 }
  0xc8   : > { %1070 = vmatmul.mubr.msk.f32.vlgmr.msra.gmra.mrb[2].mxu1 %vm373_vm1, %v608_v30  ;;  %1074 = vmatprep.mubr.msk.f32.mxu0 %vm1266_vm0, %v1265_v3 }
  0xc9   : > { %1077 = vmatprep.subr.mxu1 %v1265_v3  ;;  %1079 = vmatprep.mubr.msk.f32.mxu1 %vm1266_vm0, %v1265_v3 }
  0xca   : > { %1075 = vmatmul.mubr.msk.f32.vlgmr.msra.gmra.mrb[4].mxu0 %vm373_vm1, %v686_v32 }
 0x195   : > { %v443_v33 = vpop.f32.mrb[0].mxu0 }
 0x196   : > { %v521_v34 = vpop.f32.mrb[0].mxu1  ;;  %v1056_v35 = vpop.f32.mrb[1].mxu0 }
 0x197   : > { %v761_v36 = vrot.slane %v521_v34, 7  ;;  %v1061_v37 = vpop.f32.mrb[1].mxu1 }
 0x199   : > { %v773_v38 = vsel %vm772_vm3, %v443_v33, %v761_v36  ;;  %v599_v39 = vpop.f32.mrb[2].mxu0 }
 0x19a   : > { %v764_v40 = vrot.slane %v599_v39, 6  ;;  %v1066_v41 = vpop.f32.mrb[3].mxu0 }
 0x19b   : > { %v677_v42 = vpop.f32.mrb[2].mxu1 }
 0x19c   : > { %v775_v43 = vsel %vm774_vm4, %v773_v38, %v764_v40  ;;  %v767_v44 = vrot.slane %v677_v42, 5  ;;  %v1071_v45 = vpop.f32.mrb[3].mxu1 }
 0x19d   : > { %v755_v46 = vpop.f32.mrb[4].mxu0 }
 0x19e   : > { %v777_v47 = vsel %vm776_vm5, %v775_v43, %v767_v44  ;;  %v770_v49 = vrot.slane %v755_v46, 4  ;;  %v1076_v50 = vpop.f32.mrb[5].mxu0 }
 0x1a0   : > { %v779_v51 = vsel %vm778_vm6, %v777_v47, %v770_v49 }
 0x1a1   : > { %v780_v52 = vadd.f32 %v779_v51, %v759_v48 }
 0x1a3   : > { %782 = vst.msk [vmem:[#allocation2] sm:$0x1f] %vm350_vm2, %v780_v52 }
 0x1aa   : > { %v786_v53 = vld [vmem:[#allocation2] sm:$0x1f] }
 0x1ab   : > { %v787_v54 = vadd.f32 1e-08, %v786_v53 }
 0x1ad   : > { %1162 = vrcp.f32 %v787_v54 }
 0x1b7   : > { %v1163_v58 = vpop.eup %1162 }
 0x1b8   : > { %v796_v59 = vrot.slane %v1163_v58, %v795_v57 }
 0x1ba   : > { %v797_v60 = vmul.f32 %v796_v59, %v786_v53 }
 0x1bc   : > { %v798_v62 = vsel %vm792_vm7, %v786_v53, %v797_v60 }
 0x1bd   : > { %1078 = vmatpush3.msk.msra.mxu1 %vm810_vm8, %v798_v62 }
 0x1be   : > { %1080 = vmatmul.mubr.msk.f32.vlgmr.msra.gmra.mrb[4].mxu1 %vm806_vm9, %v799_v61 }
 0x291   : > { %v880_v0 = vpop.f32.mrb[4].mxu1 }
 0x292   : > { %v881_v1 = vadd.f32 %v880_v0, %v804_v63  ;;  %v1081_v2 = vpop.f32.mrb[5].mxu1 }
 0x294   : > { %885 = vst.msk [vmem:[%s325_s13] sm:$0xff] %vm884_vm10, %v881_v1 }
 0x295   : > { %1192 = shalt.err (!%p1189_p3)
}
 0x296   : > { %s1193_s18 = scalar_lea.hbm %s1435_s17, 128  ;;  %s1197_s11 = scalar_lea.hbm %s1488_s6, 256 }
 0x297   : > { %p1194_p5 = scmp.ne.s32.totalorder %s1435_s17, %s1193_s18  ;;  %p1198_p9 = scmp.lt.u32.totalorder %s1435_s17, %s1488_s6 }
 0x298   : > { %p1199_p12 = scmp.lt.u32.totalorder %s1197_s11, %s1193_s18  ;;  %p1201_p11 = scmp.lt.u32.totalorder %s1193_s18, %s1435_s17 }
 0x299   : > { %p1195_p6 = pnand %p1194_p5, %p1343_p4 }
 0x29a   : > { %p1200_p10 = por %p1199_p12, %p1198_p9 }
 0x29b   : > { %p1196_p7 = pneg %p1195_p6 }
 0x29c   : > { %p1202_p13 = por %p1201_p11, %p1200_p10 }
 0x29e   : > { %p1203_p0 = pnand %p1202_p13, %p1196_p7 }
 0x2a0   : > { %1206 = shalt.err (!%p1203_p0)
}
 0x2a1   : > { %1086 = dma.vmem_to_hbm [thread:$0]  (%p1343_p4), %s1437_s14, 128, %s1435_s17, %s887_s20  }
 0x2a2 PF: > { %p1098_p1 = scmp.ge.s32.totalorder %s1261_s26, 2  ;;  %s913_s15 = sand.u32 1, %s1241_s21  }
 0x2a3   : > { %s914_s16 = scalar_lea.sflag [#allocation4], %s913_s15 }
 0x2a4   : > { %p1093_p2 = pnand %p1098_p1, %p1350_p8 }
 0x2a6   : > { %1236 = dma.done.wait (!%p1093_p2), %s914_s16, 128  }
 0x2a7   : > { %1238 = vsyncadd (!%p1093_p2), %s914_s16, 4294967168  ;;  %s20_s26 = sadd.s32 1, %s1261_s26   ;;  %s1493_s21 = smov %s1245_s22 }
 0x2a8   : > { %p17_p3 = scmp.ge.s32.totalorder %s20_s26, 4   ;;  %s1494_s22 = smov %s1249_s23 }
 0x2a9   : > { %s1495_s23 = smov %s1356_s10  ;;  %s1496_s24 = smov %s1257_s25 }
 0x2aa   : > { %s1497_s25 = smov %s1499_s29  ;;  %19 = sbr.rel (!%p17_p3) target bundleno = 5 (0x5), region = 98 }
 0x2b1   :  { %919 = vsyncpa [#allocation4], 1 }
 0x2b2   :  { %921 = vsyncpa [#allocation4 + $0x1], 1 }
 0x2b3   :  { %922 = vsyncpa [#allocation5], 1 }
 0x2b4   :  { %924 = vsyncpa [#allocation5 + $0x1], 1 }

</bundles_post_ra>
